<compile_context>
chip_gen: v6e
topology: v6e:2x2x1
jax: 0.10.0
libtpu: 0.0.40
codegen_flags: <defaults>
</compile_context>

<pallas_src>
import math

import jax
import jax.numpy as jnp
import numpy as np
from jax.experimental import pallas as pl
from jax.experimental.pallas import tpu as pltpu

LANE = 128
SUBLANE = 8
NEG_INF = -1e9

# Column layout of the packed p-side (query-side) projection (width LANE).
PCOL_SCORE = 0   # p @ (Wq @ ws_q) + (bq@ws_q + bk@ws_k + bs)
PCOL_ONE = 1     # constant 1
PCOL_GATE = 2    # p @ (wg_o + wg_p) + bg
# Column layout of the trailing LANE-wide block of the packed x-side projection.
XCOL_ONE = 0     # constant 1
XCOL_SCORE = 1   # x @ (Wk @ ws_k)
XCOL_GATEV = 3   # v @ wg_o   (value-side gate contribution; col 2 stays zero)


def _round_up(n, m):
    return ((n + m - 1) // m) * m


def _pad_to(a, shape):
    pads = [(0, t - s) for s, t in zip(a.shape, shape)]
    return jnp.pad(a, pads)


def _choose_bt(B, block_b):
    """Largest divisor of B that is <= block_b and yields >= 2 grid steps."""
    best = 1
    for bt in range(1, min(B, block_b) + 1):
        if B % bt == 0 and (B // bt >= 2 or B == 1):
            best = bt
    return best


def _vmem_limit_bytes(Bt, Lxp, Lpp, Hp, mm_bytes):
    """Rough per-step VMEM demand; clamp to [32 MiB, 0.75 * physical]."""
    f32 = 4
    io = 2 * Bt * (Lxp + Lpp) * (Hp * (mm_bytes + f32) + f32)      # dbl-buffered I/O + masks
    w = 2 * (Hp * LANE + Hp * (Hp + LANE)) * mm_bytes + 2 * (3 * LANE + Hp) * f32
    lq = lk = max(Lxp, Lpp)
    inter = Bt * (lk * (Hp + LANE) + 2 * lq * lk + lq * (Hp + LANE) + Lxp * Hp) * f32
    est = io + 2 * w + inter
    cap = 64 * 1024 * 1024
    try:
        cap = pltpu.get_tpu_info().vmem_capacity_bytes
    except Exception:
        pass
    return int(min(0.75 * cap, max(32 * 1024 * 1024, 2 * est)))


# ----------------------------------------------------------------------------
# Fused Pallas kernel: both RelationAttention stages (+ outer residuals)
# for a block of batch elements; the intermediate x_new stays in VMEM.
# ----------------------------------------------------------------------------
def gat_layer_kernel(
    x_ref,    # (Bt, Lxp, Hp)  "x": ra1 queries / ra2 keys+values source
    p_ref,    # (Bt, Lpp, Hp)  "p": ra1 keys+values / ra2 queries
    mb1_ref,  # (Bt, 1, Lpp)   ra1 additive key bias (padding only)
    mb2_ref,  # (Bt, 1, Lxp)   ra2 additive key bias (mask + padding)
    wp1_ref, bp1_ref, wx1_ref, bx1_ref,   # packed ra1 weights / biases
    wp2_ref, bp2_ref, wx2_ref, bx2_ref,   # packed ra2 weights / biases
    xo_ref,   # (Bt, Lxp, Hp)  f32 out: ra1(x, p) + x
    po_ref,   # (Bt, Lpp, Hp)  f32 out: ra2(p, x_new, mask) + p
):
    hp = x_ref.shape[-1]
    x = x_ref[...]
    p = p_ref[...]

    def stage(q, kv, mb, wp, bp, wx, bx):
        bt, lq, _ = q.shape
        lk = kv.shape[1]
        mmdt = wp.dtype   # matmul dtype (bf16 on the fast path, f32 otherwise)

        # Projection matmuls, flattened over (batch * seq) for MXU occupancy.
        pp = jnp.dot(q.reshape(bt * lq, hp).astype(mmdt), wp,
                     preferred_element_type=jnp.float32) + bp
        pp = pp.reshape(bt, lq, LANE)                    # (Bt, Lq, 128)

        xx = jnp.dot(kv.reshape(bt * lk, hp).astype(mmdt), wx,
                     preferred_element_type=jnp.float32) + bx
        xx = xx.reshape(bt, lk, hp + LANE)               # (Bt, Lk, Hp+128)
        xs = xx[..., hp:]                                # (Bt, Lk, 128)

        # Pairwise additive score via a rank-2 QK^T-style einsum over the
        # packed columns:  score[q,k] = pp[q,0]*1 + 1*xs[k,1].
        score = jnp.einsum('bqf,bkf->bqk', pp.astype(mmdt), xs.astype(mmdt),
                           preferred_element_type=jnp.float32) + mb

        # Softmax over keys (mask already applied as additive -1e9 bias).
        s_max = jnp.max(score, axis=-1, keepdims=True)
        e = jnp.exp(score - s_max)
        denom = jnp.sum(e, axis=-1, keepdims=True)
        attn = e * pl.reciprocal(denom, approx=True)     # (Bt, Lq, Lk)

        # attn @ [V | packed score/gate block] in a single matmul.
        ctx_ext = jnp.einsum('bqk,bkf->bqf', attn.astype(mmdt), xx.astype(mmdt),
                             preferred_element_type=jnp.float32)
        ctx = ctx_ext[..., :hp]                          # attn @ V

        # Gate: sigmoid(out@wg_o + p@wg_p + bg) with ctx@wg_o folded into
        # ctx_ext col Hp+XCOL_GATEV and p@(wg_o+wg_p)+bg in pp col PCOL_GATE.
        g = jax.nn.sigmoid(ctx_ext[..., hp + XCOL_GATEV:hp + XCOL_GATEV + 1]
                           + pp[..., PCOL_GATE:PCOL_GATE + 1])

        # g*out + (1-g)*p + p  ==  g*ctx + 2*p   (out = ctx + p).
        return g * ctx + 2.0 * q.astype(jnp.float32)

    # Stage 1:  x_new = ra1(x, p) + x   (stays resident in VMEM for stage 2).
    x_new = stage(x, p, mb1_ref[...], wp1_ref[...], bp1_ref[...],
                  wx1_ref[...], bx1_ref[...])
    xo_ref[...] = x_new.astype(xo_ref.dtype)

    # Stage 2:  p_new = ra2(p, x_new, mask) + p.
    p_new = stage(p, x_new, mb2_ref[...], wp2_ref[...], bp2_ref[...],
                  wx2_ref[...], bx2_ref[...])
    po_ref[...] = p_new.astype(po_ref.dtype)


# ----------------------------------------------------------------------------
# Host-side weight packing (done once, outside the kernel).
# ----------------------------------------------------------------------------
def pack_relation_attention_params(prm, H, Hp, dtype=jnp.bfloat16):
    a_q = prm["Wq"] @ prm["ws_q"]                            # (H, 1)
    a_k = prm["Wk"] @ prm["ws_k"]                            # (H, 1)
    c_score = ((prm["bq"] @ prm["ws_q"])[0, 0]
               + (prm["bk"] @ prm["ws_k"])[0, 0]
               + prm["bs"][0, 0])
    wv_go = prm["Wv"] @ prm["wg_o"]                          # (H, 1)
    bv_go = (prm["bv"] @ prm["wg_o"])[0, 0]

    W_p = jnp.zeros((Hp, LANE), jnp.float32)
    W_p = W_p.at[:H, PCOL_SCORE].set(a_q[:, 0])
    W_p = W_p.at[:H, PCOL_GATE].set((prm["wg_o"] + prm["wg_p"])[:, 0])
    b_p = jnp.zeros((1, LANE), jnp.float32)
    b_p = b_p.at[0, PCOL_SCORE].set(c_score)
    b_p = b_p.at[0, PCOL_ONE].set(1.0)
    b_p = b_p.at[0, PCOL_GATE].set(prm["bg"][0, 0])

    W_x = jnp.zeros((Hp, Hp + LANE), jnp.float32)
    W_x = W_x.at[:H, :H].set(prm["Wv"])
    W_x = W_x.at[:H, Hp + XCOL_SCORE].set(a_k[:, 0])
    W_x = W_x.at[:H, Hp + XCOL_GATEV].set(wv_go[:, 0])
    b_x = jnp.zeros((1, Hp + LANE), jnp.float32)
    b_x = b_x.at[0, :H].set(prm["bv"][0])
    b_x = b_x.at[0, Hp + XCOL_ONE].set(1.0)
    b_x = b_x.at[0, Hp + XCOL_GATEV].set(bv_go)

    # Weight matrices carry the matmul dtype; biases stay f32 (added post-acc).
    return dict(W_p=W_p.astype(dtype), b_p=b_p, W_x=W_x.astype(dtype), b_x=b_x)


# ----------------------------------------------------------------------------
# Wrapper: GATLayer.forward(x, p, mask) -> (x, p), one pallas_call total.
# ----------------------------------------------------------------------------
def gat_layer(x, p, mask, packed1, packed2, *, block_b=8):
    B, Lx, H = x.shape
    _, Lp, _ = p.shape
    Hp = packed1["W_p"].shape[0]
    mm_dtype = packed1["W_p"].dtype
    Lxp = _round_up(Lx, SUBLANE)
    Lpp = _round_up(Lp, SUBLANE)
    Bt = _choose_bt(B, block_b)
    Bp = _round_up(B, Bt)

    x_pad = _pad_to(x.astype(mm_dtype), (Bp, Lxp, Hp))
    p_pad = _pad_to(p.astype(mm_dtype), (Bp, Lpp, Hp))

    # Additive mask biases (0 keep / -1e9 drop); they also mask seq/batch pad.
    mb1 = jnp.full((Bp, 1, Lpp), NEG_INF, jnp.float32).at[:B, 0, :Lp].set(0.0)
    if mask is None:
        mask_bias = jnp.zeros((B, Lx), jnp.float32)
    else:
        mask_bias = jnp.where(mask.astype(jnp.float32) > 0.5, 0.0, NEG_INF)
    mb2 = jnp.full((Bp, 1, Lxp), NEG_INF, jnp.float32)
    mb2 = mb2.at[:B, 0, :Lx].set(mask_bias)

    mm_bytes = jnp.dtype(mm_dtype).itemsize
    vmem_limit = _vmem_limit_bytes(Bt, Lxp, Lpp, Hp, mm_bytes)

    wspec = lambda shape: pl.BlockSpec(shape, lambda b: (0, 0))
    grid = (Bp // Bt,)
    x_out, p_out = pl.pallas_call(
        gat_layer_kernel,
        out_shape=(jax.ShapeDtypeStruct((Bp, Lxp, Hp), jnp.float32),
                   jax.ShapeDtypeStruct((Bp, Lpp, Hp), jnp.float32)),
        grid_spec=pltpu.PrefetchScalarGridSpec(
            num_scalar_prefetch=0,
            grid=grid,
            in_specs=[
                pl.BlockSpec((Bt, Lxp, Hp), lambda b: (b, 0, 0)),   # x
                pl.BlockSpec((Bt, Lpp, Hp), lambda b: (b, 0, 0)),   # p
                pl.BlockSpec((Bt, 1, Lpp), lambda b: (b, 0, 0)),    # mb1
                pl.BlockSpec((Bt, 1, Lxp), lambda b: (b, 0, 0)),    # mb2
                wspec((Hp, LANE)), wspec((1, LANE)),                # W_p1, b_p1
                wspec((Hp, Hp + LANE)), wspec((1, Hp + LANE)),      # W_x1, b_x1
                wspec((Hp, LANE)), wspec((1, LANE)),                # W_p2, b_p2
                wspec((Hp, Hp + LANE)), wspec((1, Hp + LANE)),      # W_x2, b_x2
            ],
            out_specs=[
                pl.BlockSpec((Bt, Lxp, Hp), lambda b: (b, 0, 0)),   # x_new
                pl.BlockSpec((Bt, Lpp, Hp), lambda b: (b, 0, 0)),   # p_new
            ],
        ),
        compiler_params=pltpu.CompilerParams(
            dimension_semantics=("parallel",),
            vmem_limit_bytes=vmem_limit),
    )(x_pad, p_pad, mb1, mb2,
      packed1["W_p"], packed1["b_p"], packed1["W_x"], packed1["b_x"],
      packed2["W_p"], packed2["b_p"], packed2["W_x"], packed2["b_x"])

    return x_out[:B, :Lx, :H], p_out[:B, :Lp, :H]


# ----------------------------------------------------------------------------
# Deterministic parameter init (PyTorch nn.Linear-style uniform bounds).
# ----------------------------------------------------------------------------
def init_relation_attention_params(key, H):
    keys = jax.random.split(key, 10)

    def lin(k, fan_in, shape):
        bound = 1.0 / math.sqrt(fan_in)
        return jax.random.uniform(k, shape, jnp.float32, -bound, bound)

    Wq = lin(keys[0], H, (H, H)); bq = lin(keys[1], H, (1, H))
    Wk = lin(keys[2], H, (H, H)); bk = lin(keys[3], H, (1, H))
    Wv = lin(keys[4], H, (H, H)); bv = lin(keys[5], H, (1, H))
    ws = lin(keys[6], 2 * H, (2 * H, 1)); bs = lin(keys[7], 2 * H, (1, 1))
    wg = lin(keys[8], 2 * H, (2 * H, 1)); bg = lin(keys[9], 2 * H, (1, 1))
    return dict(Wq=Wq, bq=bq, Wk=Wk, bk=bk, Wv=Wv, bv=bv,
                ws_q=ws[:H], ws_k=ws[H:], bs=bs,
                wg_o=wg[:H], wg_p=wg[H:], bg=bg)


# ----------------------------------------------------------------------------
# Pure-JAX reference (mirrors the PyTorch forward) for validation.
# ----------------------------------------------------------------------------
def relation_attention_ref(p, x, mask, prm):
    q = p @ prm["Wq"] + prm["bq"][0]
    k = x @ prm["Wk"] + prm["bk"][0]
    v = x @ prm["Wv"] + prm["bv"][0]
    score = (jnp.einsum("bch,ho->bco", q, prm["ws_q"])[:, :, 0][:, :, None]
             + jnp.einsum("blh,ho->blo", k, prm["ws_k"])[:, :, 0][:, None, :]
             + prm["bs"][0, 0])
    score = jnp.where(mask[:, None, :] == 0.0, -1e9, score)
    score = jax.nn.softmax(score, axis=2)
    out = jnp.einsum("bcl,bld->bcd", score, v) + p
    g = jax.nn.sigmoid(out @ prm["wg_o"] + p @ prm["wg_p"] + prm["bg"][0, 0])
    return g * out + (1.0 - g) * p


def gat_layer_ref(x, p, mask, prm1, prm2):
    B, Lp = x.shape[0], p.shape[1]
    x_ = relation_attention_ref(x, p, jnp.ones((B, Lp), jnp.float32), prm1)
    x = x_ + x
    p_ = relation_attention_ref(p, x, mask, prm2)
    p = p_ + p
    return x, p


if __name__ == "__main__":
    B, Lx, Lp, H = 2, 8, 8, 32
    key = jax.random.PRNGKey(0)
    k_x, k_p, k_r1, k_r2 = jax.random.split(key, 4)

    x = jax.random.normal(k_x, (B, Lx, H), dtype=jnp.float32)
    p = jax.random.normal(k_p, (B, Lp, H), dtype=jnp.float32)
    lengths = jnp.array([8, 5], dtype=jnp.int32)
    mask = (jnp.arange(Lx)[None, :] < lengths[:, None]).astype(jnp.float32)

    prm1 = init_relation_attention_params(k_r1, H)
    prm2 = init_relation_attention_params(k_r2, H)
    Hp = _round_up(H, LANE)

    x_want, p_want = gat_layer_ref(x, p, mask, prm1, prm2)
    gat = jax.jit(gat_layer)

    # f32 path: matches the PyTorch-equivalent reference tightly.
    packed1_f32 = pack_relation_attention_params(prm1, H, Hp, jnp.float32)
    packed2_f32 = pack_relation_attention_params(prm2, H, Hp, jnp.float32)
    x_out, p_out = gat(x, p, mask, packed1_f32, packed2_f32)
    jax.block_until_ready((x_out, p_out))
    np.testing.assert_allclose(np.asarray(x_out), np.asarray(x_want),
                               rtol=2e-3, atol=2e-3)
    np.testing.assert_allclose(np.asarray(p_out), np.asarray(p_want),
                               rtol=2e-3, atol=2e-3)

    # bf16 fast path (MXU-native on v6e/v7x): tolerance loosened only because
    # of bf16 rounding of activations/weights; accumulation stays f32.
    packed1 = pack_relation_attention_params(prm1, H, Hp, jnp.bfloat16)
    packed2 = pack_relation_attention_params(prm2, H, Hp, jnp.bfloat16)
    x_out, p_out = gat(x, p, mask, packed1, packed2)
    jax.block_until_ready((x_out, p_out))
    np.testing.assert_allclose(np.asarray(x_out), np.asarray(x_want),
                               rtol=3e-2, atol=3e-2)
    np.testing.assert_allclose(np.asarray(p_out), np.asarray(p_want),
                               rtol=3e-2, atol=3e-2)

    print("KERNEL_OK")
</pallas_src>

<mosaic_0001>
module attributes {stable_mosaic.version = 11 : i64} {
  func.func @gat_layer_kernel(%arg0: i32, %arg1: memref<1x8x128xf32, #tpu.memory_space<vmem>>, %arg2: memref<1x8x128xf32, #tpu.memory_space<vmem>>, %arg3: memref<1x1x8xf32, #tpu.memory_space<vmem>>, %arg4: memref<1x1x8xf32, #tpu.memory_space<vmem>>, %arg5: memref<128x128xf32, #tpu.memory_space<vmem>>, %arg6: memref<1x128xf32, #tpu.memory_space<vmem>>, %arg7: memref<128x256xf32, #tpu.memory_space<vmem>>, %arg8: memref<1x256xf32, #tpu.memory_space<vmem>>, %arg9: memref<128x128xf32, #tpu.memory_space<vmem>>, %arg10: memref<1x128xf32, #tpu.memory_space<vmem>>, %arg11: memref<128x256xf32, #tpu.memory_space<vmem>>, %arg12: memref<1x256xf32, #tpu.memory_space<vmem>>, %arg13: memref<1x8x128xf32, #tpu.memory_space<vmem>>, %arg14: memref<1x8x128xf32, #tpu.memory_space<vmem>>) attributes {dimension_semantics = [#tpu.dimension_semantics<parallel>], iteration_bounds = array<i64: 2>, scalar_prefetch = 0 : i64, scratch_operands = 0 : i64, tpu.core_type = #tpu.core_type<tc>, window_params = [{transform_indices = @transform_0, window_bounds = array<i64: 1, 8, 128>}, {transform_indices = @transform_1, window_bounds = array<i64: 1, 8, 128>}, {transform_indices = @transform_2, window_bounds = array<i64: 1, 1, 8>}, {transform_indices = @transform_3, window_bounds = array<i64: 1, 1, 8>}, {pipeline_mode = #tpu.pipeline_mode<synchronous>, transform_indices = @transform_4, window_bounds = array<i64: 128, 128>}, {pipeline_mode = #tpu.pipeline_mode<synchronous>, transform_indices = @transform_5, window_bounds = array<i64: 1, 128>}, {pipeline_mode = #tpu.pipeline_mode<synchronous>, transform_indices = @transform_6, window_bounds = array<i64: 128, 256>}, {pipeline_mode = #tpu.pipeline_mode<synchronous>, transform_indices = @transform_7, window_bounds = array<i64: 1, 256>}, {pipeline_mode = #tpu.pipeline_mode<synchronous>, transform_indices = @transform_8, window_bounds = array<i64: 128, 128>}, {pipeline_mode = #tpu.pipeline_mode<synchronous>, transform_indices = @transform_9, window_bounds = array<i64: 1, 128>}, {pipeline_mode = #tpu.pipeline_mode<synchronous>, transform_indices = @transform_10, window_bounds = array<i64: 128, 256>}, {pipeline_mode = #tpu.pipeline_mode<synchronous>, transform_indices = @transform_11, window_bounds = array<i64: 1, 256>}, {transform_indices = @transform_12, window_bounds = array<i64: 1, 8, 128>}, {transform_indices = @transform_13, window_bounds = array<i64: 1, 8, 128>}]} {
    %c0 = arith.constant 0 : index
    %c0_0 = arith.constant 0 : index
    %c0_1 = arith.constant 0 : index
    %0 = vector.load %arg1[%c0, %c0_0, %c0_1] : memref<1x8x128xf32, #tpu.memory_space<vmem>>, vector<1x8x128xf32>
    %c0_2 = arith.constant 0 : index
    %c0_3 = arith.constant 0 : index
    %c0_4 = arith.constant 0 : index
    %1 = vector.load %arg2[%c0_2, %c0_3, %c0_4] : memref<1x8x128xf32, #tpu.memory_space<vmem>>, vector<1x8x128xf32>
    %c0_5 = arith.constant 0 : index
    %c0_6 = arith.constant 0 : index
    %c0_7 = arith.constant 0 : index
    %2 = vector.load %arg3[%c0_5, %c0_6, %c0_7] : memref<1x1x8xf32, #tpu.memory_space<vmem>>, vector<1x1x8xf32>
    %c0_8 = arith.constant 0 : index
    %c0_9 = arith.constant 0 : index
    %3 = vector.load %arg5[%c0_8, %c0_9] : memref<128x128xf32, #tpu.memory_space<vmem>>, vector<128x128xf32>
    %c0_10 = arith.constant 0 : index
    %c0_11 = arith.constant 0 : index
    %4 = vector.load %arg6[%c0_10, %c0_11] : memref<1x128xf32, #tpu.memory_space<vmem>>, vector<1x128xf32>
    %c0_12 = arith.constant 0 : index
    %c0_13 = arith.constant 0 : index
    %5 = vector.load %arg7[%c0_12, %c0_13] : memref<128x256xf32, #tpu.memory_space<vmem>>, vector<128x256xf32>
    %c0_14 = arith.constant 0 : index
    %c0_15 = arith.constant 0 : index
    %6 = vector.load %arg8[%c0_14, %c0_15] : memref<1x256xf32, #tpu.memory_space<vmem>>, vector<1x256xf32>
    %7 = vector.shape_cast %0 : vector<1x8x128xf32> to vector<8x128xf32>
    %cst = arith.constant dense<0.000000e+00> : vector<8x128xf32>
    %8 = tpu.matmul %7, %3, %cst {dimension_numbers = #tpu.dot_dimension_numbers<[1], [0], [0], [1], [0, 0, 1, 1], [], []>} : vector<8x128xf32>, vector<128x128xf32>, vector<8x128xf32> -> vector<8x128xf32>
    %9 = vector.broadcast %4 : vector<1x128xf32> to vector<8x128xf32>
    %10 = arith.addf %8, %9 : vector<8x128xf32>
    %11 = vector.shape_cast %10 : vector<8x128xf32> to vector<1x8x128xf32>
    %12 = vector.shape_cast %1 : vector<1x8x128xf32> to vector<8x128xf32>
    %cst_16 = arith.constant dense<0.000000e+00> : vector<8x256xf32>
    %13 = tpu.matmul %12, %5, %cst_16 {dimension_numbers = #tpu.dot_dimension_numbers<[1], [0], [0], [1], [0, 0, 1, 1], [], []>} : vector<8x128xf32>, vector<128x256xf32>, vector<8x256xf32> -> vector<8x256xf32>
    %14 = vector.broadcast %6 : vector<1x256xf32> to vector<8x256xf32>
    %15 = arith.addf %13, %14 : vector<8x256xf32>
    %16 = vector.shape_cast %15 : vector<8x256xf32> to vector<1x8x256xf32>
    %17 = vector.extract_strided_slice %16 {offsets = [0, 0, 128], sizes = [1, 8, 128], strides = [1, 1, 1]} : vector<1x8x256xf32> to vector<1x8x128xf32>
    "tpu.trace_start"() <{level = 10 : i32, message = "bqf,bkf->bqk"}> : () -> ()
    %cst_17 = arith.constant dense<0.000000e+00> : vector<1x8x8xf32>
    %18 = tpu.matmul %11, %17, %cst_17 {dimension_numbers = #tpu.dot_dimension_numbers<[2], [2], [1], [1], [0, 0, 0, 1, 1, 1], [0], [0]>} : vector<1x8x128xf32>, vector<1x8x128xf32>, vector<1x8x8xf32> -> vector<1x8x8xf32>
    "tpu.trace_stop"() : () -> ()
    %19 = vector.broadcast %2 : vector<1x1x8xf32> to vector<1x8x8xf32>
    %20 = arith.addf %18, %19 : vector<1x8x8xf32>
    %cst_18 = arith.constant dense<0xFF800000> : vector<1x8xf32>
    %21 = vector.multi_reduction <maximumf>, %20, %cst_18 [2] : vector<1x8x8xf32> to vector<1x8xf32>
    %22 = vector.shape_cast %21 : vector<1x8xf32> to vector<1x8x1xf32>
    %23 = vector.broadcast %22 : vector<1x8x1xf32> to vector<1x8x8xf32>
    %24 = arith.subf %20, %23 : vector<1x8x8xf32>
    %25 = math.exp %24 : vector<1x8x8xf32>
    %cst_19 = arith.constant dense<0.000000e+00> : vector<1x8xf32>
    %26 = vector.multi_reduction <add>, %25, %cst_19 [2] : vector<1x8x8xf32> to vector<1x8xf32>
    %27 = vector.shape_cast %26 : vector<1x8xf32> to vector<1x8x1xf32>
    %28 = tpu.reciprocal %27 {approx = true} : vector<1x8x1xf32> -> vector<1x8x1xf32>
    %29 = vector.broadcast %28 : vector<1x8x1xf32> to vector<1x8x8xf32>
    %30 = arith.mulf %25, %29 : vector<1x8x8xf32>
    "tpu.trace_start"() <{level = 10 : i32, message = "bqk,bkf->bqf"}> : () -> ()
    %cst_20 = arith.constant dense<0.000000e+00> : vector<1x8x256xf32>
    %31 = tpu.matmul %30, %16, %cst_20 {dimension_numbers = #tpu.dot_dimension_numbers<[2], [1], [1], [2], [0, 0, 0, 1, 1, 2], [0], [0]>} : vector<1x8x8xf32>, vector<1x8x256xf32>, vector<1x8x256xf32> -> vector<1x8x256xf32>
    "tpu.trace_stop"() : () -> ()
    %32 = vector.extract_strided_slice %31 {offsets = [0, 0, 0], sizes = [1, 8, 128], strides = [1, 1, 1]} : vector<1x8x256xf32> to vector<1x8x128xf32>
    %33 = vector.extract_strided_slice %31 {offsets = [0, 0, 131], sizes = [1, 8, 1], strides = [1, 1, 1]} : vector<1x8x256xf32> to vector<1x8x1xf32>
    %34 = vector.extract_strided_slice %11 {offsets = [0, 0, 2], sizes = [1, 8, 1], strides = [1, 1, 1]} : vector<1x8x128xf32> to vector<1x8x1xf32>
    %35 = arith.addf %33, %34 : vector<1x8x1xf32>
    %36 = arith.negf %35 : vector<1x8x1xf32>
    %37 = math.exp %36 : vector<1x8x1xf32>
    %cst_21 = arith.constant 1.000000e+00 : f32
    %38 = vector.broadcast %cst_21 : f32 to vector<1x8x1xf32>
    %39 = arith.addf %38, %37 : vector<1x8x1xf32>
    %40 = arith.divf %38, %39 : vector<1x8x1xf32>
    %41 = vector.broadcast %40 : vector<1x8x1xf32> to vector<1x8x128xf32>
    %42 = arith.mulf %41, %32 : vector<1x8x128xf32>
    %cst_22 = arith.constant 2.000000e+00 : f32
    %43 = vector.broadcast %cst_22 : f32 to vector<1x8x128xf32>
    %44 = arith.mulf %43, %0 : vector<1x8x128xf32>
    %45 = arith.addf %42, %44 : vector<1x8x128xf32>
    %c0_23 = arith.constant 0 : index
    %c0_24 = arith.constant 0 : index
    %c0_25 = arith.constant 0 : index
    %46 = vector.load %arg13[%c0_23, %c0_24, %c0_25] : memref<1x8x128xf32, #tpu.memory_space<vmem>>, vector<1x8x128xf32>
    tpu.vector_store %arg13[%c0_23, %c0_24, %c0_25], %45 {strides = array<i32>} : memref<1x8x128xf32, #tpu.memory_space<vmem>>, vector<1x8x128xf32>,
    %c0_26 = arith.constant 0 : index
    %c0_27 = arith.constant 0 : index
    %c0_28 = arith.constant 0 : index
    %47 = vector.load %arg4[%c0_26, %c0_27, %c0_28] : memref<1x1x8xf32, #tpu.memory_space<vmem>>, vector<1x1x8xf32>
    %c0_29 = arith.constant 0 : index
    %c0_30 = arith.constant 0 : index
    %48 = vector.load %arg9[%c0_29, %c0_30] : memref<128x128xf32, #tpu.memory_space<vmem>>, vector<128x128xf32>
    %c0_31 = arith.constant 0 : index
    %c0_32 = arith.constant 0 : index
    %49 = vector.load %arg10[%c0_31, %c0_32] : memref<1x128xf32, #tpu.memory_space<vmem>>, vector<1x128xf32>
    %c0_33 = arith.constant 0 : index
    %c0_34 = arith.constant 0 : index
    %50 = vector.load %arg11[%c0_33, %c0_34] : memref<128x256xf32, #tpu.memory_space<vmem>>, vector<128x256xf32>
    %c0_35 = arith.constant 0 : index
    %c0_36 = arith.constant 0 : index
    %51 = vector.load %arg12[%c0_35, %c0_36] : memref<1x256xf32, #tpu.memory_space<vmem>>, vector<1x256xf32>
    %52 = vector.shape_cast %1 : vector<1x8x128xf32> to vector<8x128xf32>
    %cst_37 = arith.constant dense<0.000000e+00> : vector<8x128xf32>
    %53 = tpu.matmul %52, %48, %cst_37 {dimension_numbers = #tpu.dot_dimension_numbers<[1], [0], [0], [1], [0, 0, 1, 1], [], []>} : vector<8x128xf32>, vector<128x128xf32>, vector<8x128xf32> -> vector<8x128xf32>
    %54 = vector.broadcast %49 : vector<1x128xf32> to vector<8x128xf32>
    %55 = arith.addf %53, %54 : vector<8x128xf32>
    %56 = vector.shape_cast %55 : vector<8x128xf32> to vector<1x8x128xf32>
    %57 = vector.shape_cast %45 : vector<1x8x128xf32> to vector<8x128xf32>
    %cst_38 = arith.constant dense<0.000000e+00> : vector<8x256xf32>
    %58 = tpu.matmul %57, %50, %cst_38 {dimension_numbers = #tpu.dot_dimension_numbers<[1], [0], [0], [1], [0, 0, 1, 1], [], []>} : vector<8x128xf32>, vector<128x256xf32>, vector<8x256xf32> -> vector<8x256xf32>
    %59 = vector.broadcast %51 : vector<1x256xf32> to vector<8x256xf32>
    %60 = arith.addf %58, %59 : vector<8x256xf32>
    %61 = vector.shape_cast %60 : vector<8x256xf32> to vector<1x8x256xf32>
    %62 = vector.extract_strided_slice %61 {offsets = [0, 0, 128], sizes = [1, 8, 128], strides = [1, 1, 1]} : vector<1x8x256xf32> to vector<1x8x128xf32>
    "tpu.trace_start"() <{level = 10 : i32, message = "bqf,bkf->bqk"}> : () -> ()
    %cst_39 = arith.constant dense<0.000000e+00> : vector<1x8x8xf32>
    %63 = tpu.matmul %56, %62, %cst_39 {dimension_numbers = #tpu.dot_dimension_numbers<[2], [2], [1], [1], [0, 0, 0, 1, 1, 1], [0], [0]>} : vector<1x8x128xf32>, vector<1x8x128xf32>, vector<1x8x8xf32> -> vector<1x8x8xf32>
    "tpu.trace_stop"() : () -> ()
    %64 = vector.broadcast %47 : vector<1x1x8xf32> to vector<1x8x8xf32>
    %65 = arith.addf %63, %64 : vector<1x8x8xf32>
    %cst_40 = arith.constant dense<0xFF800000> : vector<1x8xf32>
    %66 = vector.multi_reduction <maximumf>, %65, %cst_40 [2] : vector<1x8x8xf32> to vector<1x8xf32>
    %67 = vector.shape_cast %66 : vector<1x8xf32> to vector<1x8x1xf32>
    %68 = vector.broadcast %67 : vector<1x8x1xf32> to vector<1x8x8xf32>
    %69 = arith.subf %65, %68 : vector<1x8x8xf32>
    %70 = math.exp %69 : vector<1x8x8xf32>
    %cst_41 = arith.constant dense<0.000000e+00> : vector<1x8xf32>
    %71 = vector.multi_reduction <add>, %70, %cst_41 [2] : vector<1x8x8xf32> to vector<1x8xf32>
    %72 = vector.shape_cast %71 : vector<1x8xf32> to vector<1x8x1xf32>
    %73 = tpu.reciprocal %72 {approx = true} : vector<1x8x1xf32> -> vector<1x8x1xf32>
    %74 = vector.broadcast %73 : vector<1x8x1xf32> to vector<1x8x8xf32>
    %75 = arith.mulf %70, %74 : vector<1x8x8xf32>
    "tpu.trace_start"() <{level = 10 : i32, message = "bqk,bkf->bqf"}> : () -> ()
    %cst_42 = arith.constant dense<0.000000e+00> : vector<1x8x256xf32>
    %76 = tpu.matmul %75, %61, %cst_42 {dimension_numbers = #tpu.dot_dimension_numbers<[2], [1], [1], [2], [0, 0, 0, 1, 1, 2], [0], [0]>} : vector<1x8x8xf32>, vector<1x8x256xf32>, vector<1x8x256xf32> -> vector<1x8x256xf32>
    "tpu.trace_stop"() : () -> ()
    %77 = vector.extract_strided_slice %76 {offsets = [0, 0, 0], sizes = [1, 8, 128], strides = [1, 1, 1]} : vector<1x8x256xf32> to vector<1x8x128xf32>
    %78 = vector.extract_strided_slice %76 {offsets = [0, 0, 131], sizes = [1, 8, 1], strides = [1, 1, 1]} : vector<1x8x256xf32> to vector<1x8x1xf32>
    %79 = vector.extract_strided_slice %56 {offsets = [0, 0, 2], sizes = [1, 8, 1], strides = [1, 1, 1]} : vector<1x8x128xf32> to vector<1x8x1xf32>
    %80 = arith.addf %78, %79 : vector<1x8x1xf32>
    %81 = arith.negf %80 : vector<1x8x1xf32>
    %82 = math.exp %81 : vector<1x8x1xf32>
    %cst_43 = arith.constant 1.000000e+00 : f32
    %83 = vector.broadcast %cst_43 : f32 to vector<1x8x1xf32>
    %84 = arith.addf %83, %82 : vector<1x8x1xf32>
    %85 = arith.divf %83, %84 : vector<1x8x1xf32>
    %86 = vector.broadcast %85 : vector<1x8x1xf32> to vector<1x8x128xf32>
    %87 = arith.mulf %86, %77 : vector<1x8x128xf32>
    %cst_44 = arith.constant 2.000000e+00 : f32
    %88 = vector.broadcast %cst_44 : f32 to vector<1x8x128xf32>
    %89 = arith.mulf %88, %1 : vector<1x8x128xf32>
    %90 = arith.addf %87, %89 : vector<1x8x128xf32>
    %c0_45 = arith.constant 0 : index
    %c0_46 = arith.constant 0 : index
    %c0_47 = arith.constant 0 : index
    %91 = vector.load %arg14[%c0_45, %c0_46, %c0_47] : memref<1x8x128xf32, #tpu.memory_space<vmem>>, vector<1x8x128xf32>
    tpu.vector_store %arg14[%c0_45, %c0_46, %c0_47], %90 {strides = array<i32>} : memref<1x8x128xf32, #tpu.memory_space<vmem>>, vector<1x8x128xf32>,
    return
  }
  func.func @transform_0(%arg0: i32) -> (i32, i32, i32) {
    %c0_i32 = arith.constant 0 : i32
    %c0_i32_0 = arith.constant 0 : i32
    %c0_i32_1 = arith.constant 0 : i32
    return %arg0, %c0_i32, %c0_i32_0 : i32, i32, i32
  }
  func.func @transform_1(%arg0: i32) -> (i32, i32, i32) {
    %c0_i32 = arith.constant 0 : i32
    %c0_i32_0 = arith.constant 0 : i32
    %c0_i32_1 = arith.constant 0 : i32
    return %arg0, %c0_i32, %c0_i32_0 : i32, i32, i32
  }
  func.func @transform_2(%arg0: i32) -> (i32, i32, i32) {
    %c0_i32 = arith.constant 0 : i32
    %c0_i32_0 = arith.constant 0 : i32
    %c0_i32_1 = arith.constant 0 : i32
    return %arg0, %c0_i32, %c0_i32_0 : i32, i32, i32
  }
  func.func @transform_3(%arg0: i32) -> (i32, i32, i32) {
    %c0_i32 = arith.constant 0 : i32
    %c0_i32_0 = arith.constant 0 : i32
    %c0_i32_1 = arith.constant 0 : i32
    return %arg0, %c0_i32, %c0_i32_0 : i32, i32, i32
  }
  func.func @transform_4(%arg0: i32) -> (i32, i32) {
    %c0_i32 = arith.constant 0 : i32
    %c0_i32_0 = arith.constant 0 : i32
    %c0_i32_1 = arith.constant 0 : i32
    return %c0_i32, %c0_i32_0 : i32, i32
  }
  func.func @transform_5(%arg0: i32) -> (i32, i32) {
    %c0_i32 = arith.constant 0 : i32
    %c0_i32_0 = arith.constant 0 : i32
    %c0_i32_1 = arith.constant 0 : i32
    return %c0_i32, %c0_i32_0 : i32, i32
  }
  func.func @transform_6(%arg0: i32) -> (i32, i32) {
    %c0_i32 = arith.constant 0 : i32
    %c0_i32_0 = arith.constant 0 : i32
    %c0_i32_1 = arith.constant 0 : i32
    return %c0_i32, %c0_i32_0 : i32, i32
  }
  func.func @transform_7(%arg0: i32) -> (i32, i32) {
    %c0_i32 = arith.constant 0 : i32
    %c0_i32_0 = arith.constant 0 : i32
    %c0_i32_1 = arith.constant 0 : i32
    return %c0_i32, %c0_i32_0 : i32, i32
  }
  func.func @transform_8(%arg0: i32) -> (i32, i32) {
    %c0_i32 = arith.constant 0 : i32
    %c0_i32_0 = arith.constant 0 : i32
    %c0_i32_1 = arith.constant 0 : i32
    return %c0_i32, %c0_i32_0 : i32, i32
  }
  func.func @transform_9(%arg0: i32) -> (i32, i32) {
    %c0_i32 = arith.constant 0 : i32
    %c0_i32_0 = arith.constant 0 : i32
    %c0_i32_1 = arith.constant 0 : i32
    return %c0_i32, %c0_i32_0 : i32, i32
  }
  func.func @transform_10(%arg0: i32) -> (i32, i32) {
    %c0_i32 = arith.constant 0 : i32
    %c0_i32_0 = arith.constant 0 : i32
    %c0_i32_1 = arith.constant 0 : i32
    return %c0_i32, %c0_i32_0 : i32, i32
  }
  func.func @transform_11(%arg0: i32) -> (i32, i32) {
    %c0_i32 = arith.constant 0 : i32
    %c0_i32_0 = arith.constant 0 : i32
    %c0_i32_1 = arith.constant 0 : i32
    return %c0_i32, %c0_i32_0 : i32, i32
  }
  func.func @transform_12(%arg0: i32) -> (i32, i32, i32) {
    %c0_i32 = arith.constant 0 : i32
    %c0_i32_0 = arith.constant 0 : i32
    %c0_i32_1 = arith.constant 0 : i32
    return %arg0, %c0_i32, %c0_i32_0 : i32, i32, i32
  }
  func.func @transform_13(%arg0: i32) -> (i32, i32, i32) {
    %c0_i32 = arith.constant 0 : i32
    %c0_i32_0 = arith.constant 0 : i32
    %c0_i32_1 = arith.constant 0 : i32
    return %arg0, %c0_i32, %c0_i32_0 : i32, i32, i32
  }
}

</mosaic_0001>

<bundles_post_ra>
// kernel: gat_layer.1
= control target key start
LH: loop header
LB: loop body
LE: loop exit
PB: predicated region body
PF: predicated region fallthrough
CT: control target
= control target key end

     0   :  { %19 = vsyncpa [#allocation3], 0  ;;  %s2374_s0 = inlined_call_operand.vmem [shape: f32[2,8,128], index: 0, kind: input, shape index: {}]   ;;  %s2375_s1 = inlined_call_operand.vmem [shape: f32[2,8,128], index: 1, kind: input, shape index: {}]   ;;  %s2376_s2 = inlined_call_operand.vmem [shape: f32[2,1,8], index: 2, kind: input, shape index: {}]   ;;  %s2377_s3 = inlined_call_operand.vmem [shape: f32[2,1,8], index: 3, kind: input, shape index: {}]   ;;  %s2378_s4 = inlined_call_operand.hbm [shape: f32[128,128], index: 4, kind: input, shape index: {}]   ;;  %s2379_s5 = inlined_call_operand.vmem [shape: f32[1,128], index: 5, kind: input, shape index: {}]   ;;  %s2380_s6 = inlined_call_operand.hbm [shape: f32[128,256], index: 6, kind: input, shape index: {}]   ;;  %s2381_s7 = inlined_call_operand.vmem [shape: f32[1,256], index: 7, kind: input, shape index: {}]   ;;  %s2382_s8 = inlined_call_operand.hbm [shape: f32[128,128], index: 8, kind: input, shape index: {}]   ;;  %s2383_s9 = inlined_call_operand.vmem [shape: f32[1,128], index: 9, kind: input, shape index: {}]   ;;  %s2384_s10 = inlined_call_operand.hbm [shape: f32[128,256], index: 10, kind: input, shape index: {}]   ;;  %s2385_s11 = inlined_call_operand.vmem [shape: f32[1,256], index: 11, kind: input, shape index: {}]   ;;  %s2386_s12 = inlined_call_operand.hbm [shape: f32[2,8,128], index: 12, kind: output, shape index: {0}]   ;;  %s2387_s13 = inlined_call_operand.hbm [shape: f32[2,8,128], index: 13, kind: output, shape index: {1}]  }
   0x1   :  { %20 = vsyncpa [#allocation6], 0 }
   0x2   :  { %21 = vsyncpa [#allocation9], 0 }
   0x3   :  { %22 = vsyncpa [#allocation4], 0 }
   0x4   :  { %24 = vsyncpa [#allocation4 + $0x1], 0 }
   0x5   :  { %25 = vsyncpa [#allocation12], 0 }
   0x6   :  { %27 = vsyncpa [#allocation12 + $0x1], 0  ;;  %s2079_s25 = smov 0   ;;  %s2081_s26 = smov 0  }
   0x7   :  { %s2083_s27 = smov 0   ;;  %s2085_s28 = smov 0  }
   0x8 LB: > { %2400 = sst [smem:[#allocation18_spill]] %s1981_s25  ;;  %s2100_s29 = sadd.s32 4294967295, %s1993_s28   ;;  %s1993_s28 = sphi %s2085_s28, %s2424_s28   ;;  %s1989_s27 = sphi %s2083_s27, %s2426_s27   ;;  %s1985_s26 = sphi %s2081_s26, %s2428_s26   ;;  %s1981_s25 = sphi %s2079_s25, %s2427_s25  }
   0x9   : > { %2401 = sst [smem:[#allocation19_spill]] %s1989_s27  ;;  %s1528_s30 = sadd.s32 4294967294, %s1993_s28  }
   0xa   : > { %s2104_s14 = sadd.s32 1, %s1993_s28   ;;  %s312_s15 = sadd.s32 1, %s1989_s27 }
   0xb   : > { %2402 = sst [smem:[#allocation20_spill]] %s2104_s14  ;;  %s309_s16 = ssub.s32 %s1993_s28, %s2104_s14 }
   0xc   : > { %p322_p0 = scmp.ne.s32.totalorder %s1989_s27, %s1985_s26  ;;  %p310_p1 = scmp.eq.s32.totalorder %s309_s16, 0 }
   0xd   : > { %p323_p2 = scmp.eq.s32.totalorder %s2100_s29, 1  ;;  %p328_p3 = scmp.ne.s32.totalorder %s1985_s26, %s1981_s25 }
   0xe   : > { %p329_p4 = scmp.eq.s32.totalorder %s1528_s30, 1  ;;  %p1529_p7 = scmp.ge.s32.totalorder %s1993_s28, 1 }
   0xf   : > { %s2115_s17 = scalar_select %p310_p1, %s1989_s27, %s312_s15  }
  0x10   : > { %p2117_p5 = por %p323_p2, %p322_p0  ;;  %p2121_p6 = por %p329_p4, %p328_p3 }
  0x11   : > { %2403 = sst [smem:[#allocation21_spill]] %s2115_s17  ;;  %p362_p8 = scmp.lt.s32.totalorder %s1993_s28, 3 }
  0x12   : > { %s2404_s18 = scalar_select %p2117_p5, 1, 0 }
  0x13   : > { %s2405_s19 = scalar_select %p2121_p6, 1, 0 }
  0x14   : > { %p2395_p9 = scmp.eq.s32.totalorder %s2100_s29, 0  ;;  %p2128_p10 = pnand %p1529_p7, %p362_p8 }
  0x15   : > { %2406 = sst [smem:[#allocation22_spill]] %s2405_s19  ;;  %s1995_s21 = smov [#allocation5]  }
  0x16   : > { %s2407_s20 = scalar_select %p2128_p10, 1, 0 }
  0x17   : > { %s390_s22 = sshll.u32 %s1995_s21, 4  ;;  %p1696_p11 = pneg %p2128_p10  ;;  %s391_s22 = int_to_ptr.vmem [resolvable:$true] %s390_s22 }
  0x18   : > { %s1996_s24 = smov [#allocation2]   ;;  %s1798_s15 = scalar_lea.vmem %s391_s22, 4096 }
  0x19   : > { %p2136_p12 = pnand %p2395_p9, %p1696_p11  ;;  %s374_s30 = sshll.u32 %s1996_s24, 4  ;;  %s375_s30 = int_to_ptr.vmem [resolvable:$true] %s374_s30 }
  0x1a   : > { %p1799_p0 = scmp.ne.s32.totalorder %s391_s22, %s1798_s15  ;;  %p1806_p3 = scmp.lt.s32.totalorder %s391_s22, %s391_s22 }
  0x1b   : > { %p1789_p13 = pneg %p2136_p12  ;;  %p1807_p4 = scmp.lt.s32.totalorder %s1798_s15, %s1798_s15 }
  0x1d   : > { %p1801_p1 = pnand %p1799_p0, %p1789_p13  ;;  %p1808_p7 = por %p1807_p4, %p1806_p3 }
  0x1f   : > { %p1802_p2 = pneg %p1801_p1 }
  0x21   : > { %p1809_p8 = pnand %p1808_p7, %p1802_p2 }
  0x23   : > { %1812 = shalt.err (!%p1809_p8)
}
  0x24   : > { %s2393_s16 = smov 256   ;;  %s2394_s21 = smov 16  }
  0x25   : > { %1702 = dma.hbm_to_vmem [thread:$0]  (!%p2136_p12), %s2380_s6, 4096, %s391_s22, [#allocation6], %s2393_s16, %s2393_s16, %s2394_s21  }
  0x26   : > { %s1824_s27 = scalar_lea.vmem %s375_s30, 2048  ;;  %p1832_p2 = scmp.lt.s32.totalorder %s375_s30, %s375_s30 }
  0x27   : > { %p1825_p11 = scmp.ne.s32.totalorder %s375_s30, %s1824_s27  ;;  %p1833_p3 = scmp.lt.s32.totalorder %s1824_s27, %s1824_s27 }
  0x29   : > { %p1827_p0 = pnand %p1825_p11, %p1789_p13  ;;  %p1834_p4 = por %p1833_p3, %p1832_p2 }
  0x2b   : > { %p1828_p1 = pneg %p1827_p0 }
  0x2d   : > { %p1835_p7 = pnand %p1834_p4, %p1828_p1 }
  0x2f   : > { %1838 = shalt.err (!%p1835_p7)
}
  0x30   : > { %s1999_s15 = smov 128   ;;  %s2000_s14 = smov 8  }
  0x31   : > { %1699 = dma.hbm_to_vmem [thread:$0]  (!%p2136_p12), %s2378_s4, 2048, %s375_s30, [#allocation3], %s1999_s15, %s1999_s15, %s2000_s14  }
  0x32   : > { %s2001_s17 = smov [#allocation7]   ;;  %s2002_s24 = smov [#allocation8]  }
  0x33   : > { %s406_s22 = sshll.u32 %s2001_s17, 4  ;;  %s422_s16 = sshll.u32 %s2002_s24, 4  ;;  %s407_s22 = int_to_ptr.vmem [resolvable:$true] %s406_s22  ;;  %s423_s16 = int_to_ptr.vmem [resolvable:$true] %s422_s16 }
  0x34   : > { %s1850_s21 = scalar_lea.vmem %s407_s22, 2048  ;;  %p1858_p1 = scmp.lt.s32.totalorder %s407_s22, %s407_s22 }
  0x35   : > { %p1851_p8 = scmp.ne.s32.totalorder %s407_s22, %s1850_s21  ;;  %p1859_p2 = scmp.lt.s32.totalorder %s1850_s21, %s1850_s21 }
  0x37   : > { %p1853_p11 = pnand %p1851_p8, %p1789_p13  ;;  %p1860_p3 = por %p1859_p2, %p1858_p1 }
  0x39   : > { %p1854_p0 = pneg %p1853_p11 }
  0x3b   : > { %p1861_p4 = pnand %p1860_p3, %p1854_p0 }
  0x3d   : > { %1864 = shalt.err (!%p1861_p4)
}
  0x3e   : > { %1705 = dma.hbm_to_vmem [thread:$0]  (!%p2136_p12), %s2382_s8, 2048, %s407_s22, [#allocation6], %s1999_s15, %s1999_s15, %s2000_s14  }
  0x3f   : > { %s1876_s19 = scalar_lea.vmem %s423_s16, 4096  ;;  %p1884_p8 = scmp.lt.s32.totalorder %s423_s16, %s423_s16 }
  0x40   : > { %p1877_p7 = scmp.ne.s32.totalorder %s423_s16, %s1876_s19  ;;  %p1885_p11 = scmp.lt.s32.totalorder %s1876_s19, %s1876_s19 }
  0x42   : > { %p1879_p9 = pnand %p1877_p7, %p1789_p13  ;;  %p1886_p5 = por %p1885_p11, %p1884_p8 }
  0x44   : > { %p1880_p6 = pneg %p1879_p9 }
  0x46   : > { %p1887_p10 = pnand %p1886_p5, %p1880_p6 }
  0x48   : > { %1890 = shalt.err (!%p1887_p10)
}
  0x49   : > { %s2409_s30 = smov 16   ;;  %s2410_s21 = smov 256  }
  0x4a   : > { %1708 = dma.hbm_to_vmem [thread:$0]  (!%p2136_p12), %s2384_s10, 4096, %s423_s16, [#allocation9], %s2410_s21, %s2410_s21, %s2409_s30  }
  0x4b   : > { %p2411_p0 = scmp.ne.s32.totalorder %s2407_s20, 0 }
  0x4c   : > { %p2412_p13 = scmp.eq.s32.totalorder (!%p2411_p0), %s2100_s29, 0 }
  0x4d   : > { %467 = sbr.rel (%p2411_p0) target bundleno = 2265 (0x8d9), region = 68 }
  0x52   : > { %1960 = dma.done.wait (%p2412_p13), [#allocation3], 2048   ;;  %p2413_p9 = pmov %p2412_p13 }
  0x54   : > { %1962 = vsyncadd (%p2413_p9), [#allocation3], 4294965248  ;;  %p2414_p5 = pmov %p2413_p9 }
  0x56   : > { %1964 = dma.done.wait (%p2414_p5), [#allocation6], 6144   ;;  %p2415_p6 = pmov %p2414_p5 }
  0x57   : > { %p2416_p10 = pmov %p2414_p5 }
  0x58   : > { %1966 = vsyncadd (%p2415_p6), [#allocation6], 4294961152 }
  0x59   : > { %1968 = dma.done.wait (%p2416_p10), [#allocation9], 4096   ;;  %p2417_p12 = pmov %p2414_p5 }
  0x5a   : > { %v2003_v0 = vmov 0.0   ;;  %vm2004_vm0 = vmmov 0   ;;  %v602_v1 = vld [vmem:[#allocation5 + $0xf8] sm:$0xff]  ;;  %v601_v2 = vld [vmem:[#allocation5 + $0xf0] sm:$0xff]  ;;  %v600_v3 = vld [vmem:[#allocation5 + $0xe8] sm:$0xff]  ;;  %p537_p1 = scmp.lt.s32.totalorder %s2100_s29, 1  ;;  %v681_v51 = vlaneseq }
  0x5b   : > { %1970 = vsyncadd (%p2417_p12), [#allocation9], 4294963200  ;;  %1596 = vmatprep.subr.mxu0 %v2003_v0  ;;  %755 = vmatprep.mubr.f32.mxu1 %v2003_v0  ;;  %v599_v4 = vld [vmem:[#allocation5 + $0xe0] sm:$0xff]  ;;  %v569_v5 = vld [vmem:[#allocation2 + $0x78] sm:$0xff]  ;;  %s2005_s24 = smov 1   ;;  %vm838_vm1 = vcmask 64512  }
  0x5c   : > { %1628 = vmatprep.mubr.msk.f32.mxu0 %vm2004_vm0, %v2003_v0  ;;  %691 = vmatprep.subr.mxu1 %v602_v1  ;;  %v598_v6 = vld [vmem:[#allocation5 + $0xd8] sm:$0xff]  ;;  %v568_v7 = vld [vmem:[#allocation2 + $0x70] sm:$0xff]  ;;  %v567_v9 = vld [vmem:[#allocation2 + $0x68] sm:$0xff]  ;;  %s2211_s14 = scalar_select %p537_p1, %s2100_s29, 1  ;;  %v2236_v52 = vshrl.u32 %v681_v51, 7 }
  0x5d   : > { %692 = vmatpush1.msra.mxu1 %v601_v2  ;;  %1597 = vmatpush3.msra.mxu0 %v569_v5  ;;  %v597_v8 = vld [vmem:[#allocation5 + $0xd0] sm:$0xff]  ;;  %v596_v10 = vld [vmem:[#allocation5 + $0xc8] sm:$0xff]  ;;  %v595_v11 = vld [vmem:[#allocation5 + $0xc0] sm:$0xff]  ;;  %p2418_p3 = scmp.ne.s32.totalorder %s2404_s18, 0  ;;  %s2007_s17 = smov [#allocation10]  }
  0x5e   : > { %693 = vmatprep.subr.mxu1 %v600_v3  ;;  %1598 = vmatprep.subr.mxu0 %v2003_v0  ;;  %v566_v12 = vld [vmem:[#allocation2 + $0x60] sm:$0xff]  ;;  %v594_v13 = vld [vmem:[#allocation5 + $0xb8] sm:$0xff]  ;;  %v593_v14 = vld [vmem:[#allocation5 + $0xb0] sm:$0xff]  ;;  %s1542_s20 = sshll.u32 %s2211_s14, 3  ;;  %v687_v53 = vsub.s32 1, %v2236_v52  ;;  %v683_v54 = vsub.s32 0, %v2236_v52  ;;  %s547_s16 = scalar_lea.vmem %s2376_s2, %s2211_s14 }
  0x5f   : > { %694 = vmatpush1.msra.mxu1 %v599_v4  ;;  %1599 = vmatpush3.msra.mxu0 %v568_v7  ;;  %v565_v15 = vld [vmem:[#allocation2 + $0x58] sm:$0xff]  ;;  %v592_v16 = vld [vmem:[#allocation5 + $0xa8] sm:$0xff]  ;;  %v591_v17 = vld [vmem:[#allocation5 + $0xa0] sm:$0xff]  ;;  %s544_s15 = scalar_lea.vmem %s2375_s1, %s1542_s20  ;;  %s540_s27 = scalar_lea.vmem %s2374_s0, %s1542_s20 }
  0x60   : > { %695 = vmatprep.subr.mxu1 %v598_v6  ;;  %1600 = vmatprep.subr.mxu0 %v2003_v0  ;;  %v564_v18 = vld [vmem:[#allocation2 + $0x50] sm:$0xff]  ;;  %v590_v19 = vld [vmem:[#allocation5 + $0x98] sm:$0xff]  ;;  %v563_v21 = vld [vmem:[#allocation2 + $0x48] sm:$0xff]  ;;  %s550_s23 = scalar_lea.vmem %s2377_s3, %s2211_s14  ;;  %s2398_s14 = sshll.u32 %s2100_s29, 7 }
  0x61   : > { %696 = vmatpush1.msra.mxu1 %v597_v8  ;;  %1601 = vmatpush3.msra.mxu0 %v567_v9  ;;  %v589_v20 = vld [vmem:[#allocation5 + $0x90] sm:$0xff]  ;;  %v588_v22 = vld [vmem:[#allocation5 + $0x88] sm:$0xff]  ;;  %v587_v23 = vld [vmem:[#allocation5 + $0x80] sm:$0xff]  ;;  %s1895_s20 = sshll.u32 %s2007_s17, 4  ;;  %s1896_s20 = int_to_ptr.vmem [resolvable:$false] %s1895_s20 }
  0x62   : > { %697 = vmatprep.subr.mxu1 %v596_v10  ;;  %1602 = vmatprep.subr.mxu0 %v2003_v0  ;;  %v562_v24 = vld [vmem:[#allocation2 + $0x40] sm:$0xff]  ;;  %v586_v25 = vld [vmem:[#allocation5 + $0x78] sm:$0xff]  ;;  %v585_v26 = vld [vmem:[#allocation5 + $0x70] sm:$0xff] }
  0x63   : > { %698 = vmatpush1.msra.mxu1 %v595_v11  ;;  %1603 = vmatpush3.msra.mxu0 %v566_v12  ;;  %v561_v27 = vld [vmem:[#allocation2 + $0x38] sm:$0xff]  ;;  %v584_v28 = vld [vmem:[#allocation5 + $0x68] sm:$0xff]  ;;  %v583_v29 = vld [vmem:[#allocation5 + $0x60] sm:$0xff] }
  0x64   : > { %699 = vmatprep.subr.mxu1 %v594_v13  ;;  %1604 = vmatprep.subr.mxu0 %v2003_v0  ;;  %v560_v30 = vld [vmem:[#allocation2 + $0x30] sm:$0xff]  ;;  %v582_v31 = vld [vmem:[#allocation5 + $0x58] sm:$0xff]  ;;  %v559_v33 = vld [vmem:[#allocation2 + $0x28] sm:$0xff] }
  0x65   : > { %700 = vmatpush1.msra.mxu1 %v593_v14  ;;  %1605 = vmatpush3.msra.mxu0 %v565_v15  ;;  %v581_v32 = vld [vmem:[#allocation5 + $0x50] sm:$0xff]  ;;  %v580_v34 = vld [vmem:[#allocation5 + $0x48] sm:$0xff]  ;;  %v579_v35 = vld [vmem:[#allocation5 + $0x40] sm:$0xff] }
  0x66   : > { %701 = vmatprep.subr.mxu1 %v592_v16  ;;  %1606 = vmatprep.subr.mxu0 %v2003_v0  ;;  %v558_v36 = vld [vmem:[#allocation2 + $0x20] sm:$0xff]  ;;  %v578_v37 = vld [vmem:[#allocation5 + $0x38] sm:$0xff]  ;;  %v577_v38 = vld [vmem:[#allocation5 + $0x30] sm:$0xff]  ;;  %v2006_v16 = vmov 3  }
  0x67   : > { %702 = vmatpush1.msra.mxu1 %v591_v17  ;;  %1607 = vmatpush3.msra.mxu0 %v564_v18  ;;  %v557_v39 = vld [vmem:[#allocation2 + $0x18] sm:$0xff]  ;;  %v576_v40 = vld [vmem:[#allocation5 + $0x28] sm:$0xff]  ;;  %v575_v41 = vld [vmem:[#allocation5 + $0x20] sm:$0xff] }
  0x68   : > { %703 = vmatprep.subr.mxu1 %v590_v19  ;;  %1608 = vmatprep.subr.mxu0 %v2003_v0  ;;  %v556_v42 = vld [vmem:[#allocation2 + $0x10] sm:$0xff]  ;;  %v574_v43 = vld [vmem:[#allocation5 + $0x18] sm:$0xff]  ;;  %v555_v45 = vld [vmem:[#allocation2 + $0x8] sm:$0xff] }
  0x69   : > { %704 = vmatpush1.msra.mxu1 %v589_v20  ;;  %1609 = vmatpush3.msra.mxu0 %v563_v21  ;;  %v573_v44 = vld [vmem:[#allocation5 + $0x10] sm:$0xff]  ;;  %v572_v46 = vld [vmem:[#allocation5 + $0x8] sm:$0xff]  ;;  %v571_v47 = vld [vmem:[#allocation5] sm:$0xff] }
  0x6a   : > { %705 = vmatprep.subr.mxu1 %v588_v22  ;;  %1610 = vmatprep.subr.mxu0 %v2003_v0  ;;  %v554_v48 = vld [vmem:[#allocation2] sm:$0xff]  ;;  %v993_v17 = vld [vmem:[#allocation8 + $0xf8] sm:$0xff]  ;;  %v992_v18 = vld [vmem:[#allocation8 + $0xf0] sm:$0xff] }
  0x6b   : > { %706 = vmatpush1.msra.mxu1 %v587_v23  ;;  %1611 = vmatpush3.msra.mxu0 %v562_v24  ;;  %v2225_v49 = vld [vmem:[%s544_s15] sm:$0xff]  ;;  %v991_v19 = vld [vmem:[#allocation8 + $0xe8] sm:$0xff]  ;;  %v960_v21 = vld [vmem:[#allocation7 + $0x78] sm:$0xff]  ;;  %s2282_s15 = sand.u32 1, %s1985_s26  }
  0x6c   : > { %707 = vmatprep.subr.mxu1 %v586_v25  ;;  %1612 = vmatprep.subr.mxu0 %v2003_v0  ;;  %v2227_v50 = vld [vmem:[%s540_s27] sm:$0xff]  ;;  %v989_v22 = vld [vmem:[#allocation8 + $0xd8] sm:$0xff]  ;;  %v959_v23 = vld [vmem:[#allocation7 + $0x70] sm:$0xff]  ;;  %s2399_s22 = sshll.u32 %s2282_s15, 3  ;;  %s2316_s27 = scalar_lea.hbm %s2386_s12, %s2398_s14 }
  0x6d   : > { %708 = vmatpush1.msra.mxu1 %v585_v26  ;;  %1613 = vmatpush3.msra.mxu0 %v561_v27  ;;  %v603_v55 = vld [vmem:[%s2381_s7] sm:$0x3]  ;;  %v988_v24 = vld [vmem:[#allocation8 + $0xd0] sm:$0xff]  ;;  %v958_v25 = vld [vmem:[#allocation7 + $0x68] sm:$0xff]  ;;  %s2288_s25 = scalar_lea.vmem [#allocation10], %s2399_s22  ;;  %s1335_s30 = scalar_lea.sflag [#allocation4], %s2282_s15 }
  0x6e   : > { %709 = vmatprep.subr.mxu1 %v584_v28  ;;  %1614 = vmatprep.subr.mxu0 %v2003_v0  ;;  %v1544_v56 = vld [vmem:[%s2379_s5] ss:$0 sm:$0xff]  ;;  %v688_v57 = vrot.slane %v603_v55, %v687_v53  ;;  %v684_v58 = vrot.slane %v603_v55, %v683_v54  ;;  %v987_v26 = vld [vmem:[#allocation8 + $0xc8] sm:$0xff]  ;;  %s1353_s19 = sshll.u32 %s2288_s25, 4  ;;  %s1354_s19 = int_to_ptr.vmem [resolvable:$true] %s1353_s19 }
  0x6f   : > { %710 = vmatpush1.msra.mxu1 %v583_v29  ;;  %1615 = vmatpush3.msra.mxu0 %v560_v30  ;;  %v1545_v3 = vld [vmem:[%s547_s16] ss:$0 sm:$0xff]  ;;  %v985_v29 = vld [vmem:[#allocation8 + $0xb8] sm:$0xff]  ;;  %v984_v30 = vld [vmem:[#allocation8 + $0xb0] sm:$0xff]  ;;  %s1891_s21 = scalar_lea.vmem %s1354_s19, 128  ;;  %p1898_p8 = scmp.lt.s32.totalorder %s1354_s19, %s1896_s20 }
  0x70   : > { %711 = vmatprep.subr.mxu1 %v582_v31  ;;  %1616 = vmatprep.subr.mxu0 %v2003_v0  ;;  %v990_v20 = vld [vmem:[#allocation8 + $0xe0] sm:$0xff]  ;;  %v956_v31 = vld [vmem:[#allocation7 + $0x58] sm:$0xff]  ;;  %v950_v51 = vld [vmem:[#allocation7 + $0x28] sm:$0xff]  ;;  %p1892_p2 = scmp.ne.s32.totalorder %s1354_s19, %s1891_s21 }
  0x71   : > { %712 = vmatpush1.msra.mxu1 %v581_v32  ;;  %1617 = vmatpush3.msra.mxu0 %v559_v33  ;;  %v986_v27 = vld [vmem:[#allocation8 + $0xc0] sm:$0xff]  ;;  %v983_v32 = vld [vmem:[#allocation8 + $0xa8] sm:$0xff] }
  0x72   : > { %713 = vmatprep.subr.mxu1 %v580_v34  ;;  %1618 = vmatprep.subr.mxu0 %v2003_v0  ;;  %v957_v28 = vld [vmem:[#allocation7 + $0x60] sm:$0xff]  ;;  %v955_v34 = vld [vmem:[#allocation7 + $0x50] sm:$0xff]  ;;  %v971_v55 = vld [vmem:[#allocation8 + $0x48] sm:$0xff]  ;;  %p1893_p4 = pnand %p1892_p2, %p2418_p3 }
  0x73   : > { %714 = vmatpush1.msra.mxu1 %v579_v35  ;;  %1619 = vmatpush3.msra.mxu0 %v558_v36  ;;  %v982_v33 = vld [vmem:[#allocation8 + $0xa0] sm:$0xff]  ;;  %v981_v35 = vld [vmem:[#allocation8 + $0x98] sm:$0xff]  ;;  %v980_v36 = vld [vmem:[#allocation8 + $0x90] sm:$0xff] }
  0x74   : > { %715 = vmatprep.subr.mxu1 %v578_v37  ;;  %1620 = vmatprep.subr.mxu0 %v2003_v0  ;;  %v954_v37 = vld [vmem:[#allocation7 + $0x48] sm:$0xff]  ;;  %p1894_p7 = pneg %p1893_p4 }
  0x75   : > { %716 = vmatpush1.msra.mxu1 %v577_v38  ;;  %1621 = vmatpush3.msra.mxu0 %v557_v39  ;;  %v979_v38 = vld [vmem:[#allocation8 + $0x88] sm:$0xff]  ;;  %v978_v39 = vld [vmem:[#allocation8 + $0x80] sm:$0xff] }
  0x76   : > { %717 = vmatprep.subr.mxu1 %v576_v40  ;;  %1622 = vmatprep.subr.mxu0 %v2003_v0  ;;  %v953_v40 = vld [vmem:[#allocation7 + $0x40] sm:$0xff] }
  0x77   : > { %718 = vmatpush1.msra.mxu1 %v575_v41  ;;  %1623 = vmatpush3.msra.mxu0 %v556_v42  ;;  %v977_v41 = vld [vmem:[#allocation8 + $0x78] sm:$0xff]  ;;  %v976_v42 = vld [vmem:[#allocation8 + $0x70] sm:$0xff] }
  0x78   : > { %719 = vmatprep.subr.mxu1 %v574_v43  ;;  %1624 = vmatprep.subr.mxu0 %v2003_v0  ;;  %v952_v43 = vld [vmem:[#allocation7 + $0x38] sm:$0xff] }
  0x79   : > { %720 = vmatpush1.msra.mxu1 %v573_v44  ;;  %1625 = vmatpush3.msra.mxu0 %v555_v45  ;;  %v975_v44 = vld [vmem:[#allocation8 + $0x68] sm:$0xff]  ;;  %v974_v45 = vld [vmem:[#allocation8 + $0x60] sm:$0xff] }
  0x7a   : > { %721 = vmatprep.subr.mxu1 %v572_v46  ;;  %1626 = vmatprep.subr.mxu0 %v2003_v0  ;;  %v951_v46 = vld [vmem:[#allocation7 + $0x30] sm:$0xff] }
  0x7b   : > { %722 = vmatpush1.msra.mxu1 %v571_v47  ;;  %1627 = vmatpush3.msra.mxu0 %v554_v48  ;;  %v973_v47 = vld [vmem:[#allocation8 + $0x58] sm:$0xff]  ;;  %v972_v48 = vld [vmem:[#allocation8 + $0x50] sm:$0xff] }
  0x7c   : > { %756 = vmatmul.mubr.f32.vlgmr.msra.gmra.mxu1 %v2225_v49  ;;  %1629 = vmatmul.mubr.f32.vlgmr.msra.gmra.mxu0 %v2227_v50 }
  0x7d   : > { %1631 = vmatprep.subr.mxu0 %v2003_v0  ;;  %1633 = vmatprep.mubr.msk.f32.mxu0 %vm2004_vm0, %v2003_v0 }
  0x7e   : > { %917 = vmatprep.mubr.f32.mxu1 %v2003_v0  ;;  %1769 = vset.pattern.permute.xlu1 %v2006_v16 }
  0x7f   : > { %1770 = vset.pattern.permute.xlu0 %v2006_v16 }
 0x13c   : > { %v757_v59 = vpop.f32.mrf.mxu1  ;;  %v676_v60 = vpop.f32.mrf.mxu0 }
 0x13d   : > { %v677_v61 = vadd.f32 %v1544_v56, %v676_v60  ;;  %v758_v2 = vadd.f32 %v757_v59, %v684_v58  ;;  %v970_v56 = vld [vmem:[#allocation8 + $0x40] sm:$0xff]  ;;  %v969_v58 = vld [vmem:[#allocation8 + $0x38] sm:$0xff]  ;;  %v968_v59 = vld [vmem:[#allocation8 + $0x30] sm:$0xff] }
 0x13e   : > { %v759_v62 = vpop.f32.mrf.mxu1  ;;  %v1630_v63 = vpop.f32.mrf.mxu0  ;;  %v967_v60 = vld [vmem:[#allocation8 + $0x28] sm:$0xff] }
 0x13f   : > { %v760_v1 = vadd.f32 %v759_v62, %v688_v57  ;;  %925 = vrot.lane.b32.xlu1 %v677_v61, %s2005_s24  ;;  %v949_v57 = vld [vmem:[#allocation7 + $0x20] sm:$0xff] }
 0x141   : > { %1632 = vmatpush3.xpose.msra.mxu0 %v760_v1  ;;  %883 = vmatprep.subr.mxu1 %v760_v1 }
 0x142   : > { %884 = vmatpush1.msra.mxu1 %v758_v2  ;;  %1636 = vmatprep.subr.mxu0 %v2003_v0 }
 0x143   : > { %1082 = vmatprep.subr.mxu1 %v993_v17 }
 0x144   : > { %1634 = vmatmul.mubr.f32.vlgmr.msra.gmra.mxu0 %v677_v61  ;;  %v966_v61 = vld [vmem:[#allocation8 + $0x20] sm:$0xff] }
 0x145   : > { %1668 = vmatprep.mubr.msk.f32.mxu0 %vm2004_vm0, %v2003_v0  ;;  %1637 = vmatpush3.msra.mxu0 %v960_v21  ;;  %v994_v21 = vld [vmem:[%s2385_s11] sm:$0x3] }
 0x146   : > { %1638 = vmatprep.subr.mxu0 %v2003_v0 }
 0x147   : > { %1639 = vmatpush3.msra.mxu0 %v959_v23 }
 0x148   : > { %1640 = vmatprep.subr.mxu0 %v2003_v0 }
 0x149   : > { %1641 = vmatpush3.msra.mxu0 %v958_v25 }
 0x14a   : > { %1642 = vmatprep.subr.mxu0 %v2003_v0 }
 0x14b   : > { %1643 = vmatpush3.msra.mxu0 %v957_v28 }
 0x14c   : > { %1644 = vmatprep.subr.mxu0 %v2003_v0 }
 0x14d   : > { %1645 = vmatpush3.msra.mxu0 %v956_v31 }
 0x14e   : > { %1646 = vmatprep.subr.mxu0 %v2003_v0 }
 0x14f   : > { %1647 = vmatpush3.msra.mxu0 %v955_v34 }
 0x150   : > { %1648 = vmatprep.subr.mxu0 %v2003_v0 }
 0x151   : > { %1649 = vmatpush3.msra.mxu0 %v954_v37 }
 0x152   : > { %1650 = vmatprep.subr.mxu0 %v2003_v0 }
 0x153   : > { %1651 = vmatpush3.msra.mxu0 %v953_v40 }
 0x154   : > { %1652 = vmatprep.subr.mxu0 %v2003_v0 }
 0x155   : > { %1653 = vmatpush3.msra.mxu0 %v952_v43 }
 0x156   : > { %1654 = vmatprep.subr.mxu0 %v2003_v0 }
 0x157   : > { %1655 = vmatpush3.msra.mxu0 %v951_v46 }
 0x158   : > { %1656 = vmatprep.subr.mxu0 %v2003_v0 }
 0x159   : > { %1657 = vmatpush3.msra.mxu0 %v950_v51 }
 0x15a   : > { %1658 = vmatprep.subr.mxu0 %v2003_v0 }
 0x15b   : > { %1659 = vmatpush3.msra.mxu0 %v949_v57 }
 0x15c   : > { %1660 = vmatprep.subr.mxu0 %v2003_v0 }
 0x1b1   : > { %v926_v63 = vpop.permute.xlu1 %925 }
 0x204   : > { %v834_v4 = vpop.f32.mrf.mxu0 }
 0x205   : > { %v835_v5 = vadd.f32 %v1545_v3, %v834_v4 }
 0x206   : > { %v1635_v6 = vpop.f32.mrf.mxu0 }
 0x207   : > { %v839_v7 = vsel %vm838_vm1, %v835_v5, -inf  ;;  %v965_v6 = vld [vmem:[#allocation8 + $0x18] sm:$0xff] }
 0x208   : > { %840 = vmax.xlane.f32.xlu0 %v839_v7  ;;  %v948_v7 = vld [vmem:[#allocation7 + $0x18] sm:$0xff] }
 0x209   : > { %1661 = vmatpush3.msra.mxu0 %v948_v7 }
 0x20a   : > { %1662 = vmatprep.subr.mxu0 %v2003_v0 }
 0x291   : > { %v841_v8 = vpop.xlane.xlu0 %840 }
 0x292   : > { %v842_v9 = vsub.f32 %v835_v5, %v841_v8  ;;  %v964_v8 = vld [vmem:[#allocation8 + $0x10] sm:$0xff] }
 0x294   : > { %v843_v10 = vmul.f32 1.442695, %v842_v9  ;;  %v963_v9 = vld [vmem:[#allocation8 + $0x8] sm:$0xff] }
 0x296   : > { %1771 = vpow2.f32 %v843_v10  ;;  %v947_v10 = vld [vmem:[#allocation7 + $0x10] sm:$0xff] }
 0x297   : > { %1663 = vmatpush3.msra.mxu0 %v947_v10 }
 0x298   : > { %1664 = vmatprep.subr.mxu0 %v2003_v0 }
 0x2a3   : > { %v1772_v11 = vpop.eup %1771 }
 0x2a4   : > { %v845_v12 = vsel %vm838_vm1, %v1772_v11, 0.0 }
 0x2a5   : > { %846 = vadd.xlane.f32.xlu0 %v845_v12 }
 0x32e   : > { %v847_v13 = vpop.xlane.xlu0 %846 }
 0x32f   : > { %1773 = vrcp.f32 %v847_v13  ;;  %v946_v13 = vld [vmem:[#allocation7 + $0x8] sm:$0xff] }
 0x330   : > { %1665 = vmatpush3.msra.mxu0 %v946_v13 }
 0x331   : > { %1666 = vmatprep.subr.mxu0 %v2003_v0 }
 0x33c   : > { %v1774_v14 = vpop.eup %1773 }
 0x33d   : > { %v849_v15 = vmul.f32 %v1774_v14, %v1772_v11  ;;  %v962_v11 = vld [vmem:[#allocation8] sm:$0xff] }
 0x33e   : > { %v945_v14 = vld [vmem:[#allocation7] sm:$0xff] }
 0x33f   : > { %1546 = vmatmul.mubr.msk.f32.vlgmr.msra.gmra.mxu1 %vm838_vm1, %v849_v15  ;;  %1667 = vmatpush3.msra.mxu0 %v945_v14  ;;  %v941_v15 = vmul.f32 2.0, %v2227_v50  ;;  %v1079_v50 = vrot.slane %v994_v21, %v687_v53  ;;  %v1549_v53 = vld [vmem:[%s550_s23] ss:$0 sm:$0xff]  ;;  %s1897_s23 = scalar_lea.vmem %s1896_s20, 256 }
 0x340   : > { %1146 = vmatprep.mubr.f32.mxu1 %v2003_v0  ;;  %1083 = vmatpush1.msra.mxu1 %v992_v18  ;;  %p1899_p11 = scmp.lt.s32.totalorder %s1897_s23, %s1891_s21 }
 0x341   : > { %1084 = vmatprep.subr.mxu1 %v991_v19  ;;  %1669 = vmatmul.mubr.f32.vlgmr.msra.gmra.mxu0 %v2225_v49 }
 0x342   : > { %1085 = vmatpush1.msra.mxu1 %v990_v20  ;;  %1671 = vmatprep.subr.mxu0 %v2003_v0  ;;  %p1900_p0 = por %p1899_p11, %p1898_p8 }
 0x343   : > { %1086 = vmatprep.subr.mxu1 %v989_v22  ;;  %1673 = vmatprep.mubr.msk.f32.mxu0 %vm2004_vm0, %v2003_v0  ;;  %v1075_v22 = vrot.slane %v994_v21, %v683_v54 }
 0x344   : > { %1087 = vmatpush1.msra.mxu1 %v988_v24  ;;  %v1548_v24 = vld [vmem:[%s2383_s9] ss:$0 sm:$0xff]  ;;  %p1901_p13 = pnand %p1900_p0, %p1894_p7 }
 0x345   : > { %1088 = vmatprep.subr.mxu1 %v987_v26 }
 0x346   : > { %1089 = vmatpush1.msra.mxu1 %v986_v27 }
 0x347   : > { %1090 = vmatprep.subr.mxu1 %v985_v29 }
 0x348   : > { %1091 = vmatpush1.msra.mxu1 %v984_v30 }
 0x349   : > { %1092 = vmatprep.subr.mxu1 %v983_v32 }
 0x34a   : > { %1093 = vmatpush1.msra.mxu1 %v982_v33 }
 0x34b   : > { %1094 = vmatprep.subr.mxu1 %v981_v35 }
 0x34c   : > { %1095 = vmatpush1.msra.mxu1 %v980_v36 }
 0x34d   : > { %1096 = vmatprep.subr.mxu1 %v979_v38 }
 0x34e   : > { %1097 = vmatpush1.msra.mxu1 %v978_v39 }
 0x34f   : > { %1098 = vmatprep.subr.mxu1 %v977_v41 }
 0x350   : > { %1099 = vmatpush1.msra.mxu1 %v976_v42 }
 0x351   : > { %1100 = vmatprep.subr.mxu1 %v975_v44 }
 0x352   : > { %1101 = vmatpush1.msra.mxu1 %v974_v45 }
 0x353   : > { %1102 = vmatprep.subr.mxu1 %v973_v47 }
 0x354   : > { %1103 = vmatpush1.msra.mxu1 %v972_v48 }
 0x355   : > { %1104 = vmatprep.subr.mxu1 %v971_v55 }
 0x356   : > { %1105 = vmatpush1.msra.mxu1 %v970_v56 }
 0x357   : > { %1106 = vmatprep.subr.mxu1 %v969_v58 }
 0x358   : > { %1107 = vmatpush1.msra.mxu1 %v968_v59 }
 0x359   : > { %1108 = vmatprep.subr.mxu1 %v967_v60 }
 0x35a   : > { %1109 = vmatpush1.msra.mxu1 %v966_v61 }
 0x35b   : > { %1110 = vmatprep.subr.mxu1 %v965_v6 }
 0x35c   : > { %1111 = vmatpush1.msra.mxu1 %v964_v8 }
 0x35d   : > { %1112 = vmatprep.subr.mxu1 %v963_v9 }
 0x35e   : > { %1113 = vmatpush1.msra.mxu1 %v962_v11 }
 0x3ff   : > { %v919_v62 = vpop.f32.mrf.mxu1 }
 0x401   : > { %v921_v1 = vpop.f32.mrf.mxu1  ;;  %v1067_v19 = vpop.f32.mrf.mxu0 }
 0x402   : > { %v928_v2 = vadd.f32 %v926_v63, %v921_v1  ;;  %v1068_v27 = vadd.f32 %v1548_v24, %v1067_v19 }
 0x403   : > { %v1670_v20 = vpop.f32.mrf.mxu0 }
 0x404   : > { %v1547_v3 = vmul.f32 -1.442695, %v928_v2 }
 0x406   : > { %1775 = vpow2.f32 %v1547_v3 }
 0x413   : > { %v1776_v4 = vpop.eup %1775 }
 0x414   : > { %v932_v5 = vadd.f32 1.0, %v1776_v4 }
 0x416   : > { %1777 = vrcp.f32 %v932_v5 }
 0x423   : > { %v1778_v12 = vpop.eup %1777 }
 0x424   : > { %937 = vperm.xlu1 %1769, %v1778_v12  }
 0x49f   : > { %v938_v16 = vpop.permute.xlu1 %937 }
 0x4a0   : > { %v940_v17 = vmul.f32 %v938_v16, %v919_v62 }
 0x4a2   : > { %v942_v18 = vadd.f32 %v941_v15, %v940_v17 }
 0x4a4   : > { %1147 = vmatmul.mubr.f32.vlgmr.msra.gmra.mxu1 %v942_v18  ;;  %943 = vst [vmem:[%s2288_s25] sm:$0xff] %v942_v18 }
 0x4a5   : > { %1307 = vmatprep.mubr.f32.mxu1 %v2003_v0 }
 0x564   : > { %v1148_v23 = vpop.f32.mrf.mxu1 }
 0x565   : > { %v1149_v26 = vadd.f32 %v1148_v23, %v1075_v22 }
 0x566   : > { %v1150_v25 = vpop.f32.mrf.mxu1 }
 0x567   : > { %v1151_v0 = vadd.f32 %v1150_v25, %v1079_v50 }
 0x569   : > { %1672 = vmatpush3.xpose.msra.mxu0 %v1151_v0  ;;  %1273 = vmatprep.subr.mxu1 %v1151_v0 }
 0x56a   : > { %1274 = vmatpush1.msra.mxu1 %v1149_v26 }
 0x56c   : > { %1674 = vmatmul.mubr.f32.vlgmr.msra.gmra.mxu0 %v1068_v27 }
 0x62c   : > { %v1225_v52 = vpop.f32.mrf.mxu0 }
 0x62d   : > { %v1226_v54 = vadd.f32 %v1549_v53, %v1225_v52 }
 0x62e   : > { %v1675_v28 = vpop.f32.mrf.mxu0 }
 0x62f   : > { %v1229_v29 = vsel %vm838_vm1, %v1226_v54, -inf }
 0x630   : > { %1230 = vmax.xlane.f32.xlu0 %v1229_v29 }
 0x646   : > { %1315 = vrot.lane.b32.xlu0 %v1068_v27, %s2005_s24 }
 0x6b9   : > { %v1231_v30 = vpop.xlane.xlu0 %1230 }
 0x6ba   : > { %v1232_v31 = vsub.f32 %v1226_v54, %v1231_v30 }
 0x6bc   : > { %v1233_v32 = vmul.f32 1.442695, %v1232_v31 }
 0x6bd   : > { %v1316_v39 = vpop.permute.xlu0 %1315 }
 0x6be   : > { %1779 = vpow2.f32 %v1233_v32 }
 0x6cb   : > { %v1780_v33 = vpop.eup %1779 }
 0x6cc   : > { %v1235_v34 = vsel %vm838_vm1, %v1780_v33, 0.0 }
 0x6cd   : > { %1236 = vadd.xlane.f32.xlu1 %v1235_v34 }
 0x756   : > { %v1237_v35 = vpop.xlane.xlu1 %1236 }
 0x757   : > { %1781 = vrcp.f32 %v1237_v35 }
 0x764   : > { %v1782_v36 = vpop.eup %1781 }
 0x765   : > { %v1239_v37 = vmul.f32 %v1782_v36, %v1780_v33 }
 0x767   : > { %1550 = vmatmul.mubr.msk.f32.vlgmr.msra.gmra.mxu1 %vm838_vm1, %v1239_v37 }
 0x827   : > { %v1309_v38 = vpop.f32.mrf.mxu1 }
 0x829   : > { %v1311_v40 = vpop.f32.mrf.mxu1 }
 0x82a   : > { %v1318_v41 = vadd.f32 %v1316_v39, %v1311_v40 }
 0x82c   : > { %v1551_v42 = vmul.f32 -1.442695, %v1318_v41 }
 0x82e   : > { %1783 = vpow2.f32 %v1551_v42 }
 0x83b   : > { %v1784_v43 = vpop.eup %1783 }
 0x83c   : > { %v1322_v44 = vadd.f32 1.0, %v1784_v43 }
 0x83e   : > { %1785 = vrcp.f32 %v1322_v44 }
 0x84b   : > { %v1786_v45 = vpop.eup %1785 }
 0x84c   : > { %1327 = vperm.xlu0 %1770, %v1786_v45  }
 0x84d   : > { %1904 = shalt.err (!%p1901_p13)
}
 0x84e   : > { %s1905_s25 = scalar_lea.hbm %s2316_s27, 128  ;;  %s1909_s17 = scalar_lea.hbm %s2386_s12, 256 }
 0x84f   : > { %p1906_p9 = scmp.ne.s32.totalorder %s2316_s27, %s1905_s25  ;;  %p1910_p10 = scmp.lt.s32.totalorder %s2316_s27, %s2386_s12 }
 0x850   : > { %p1911_p12 = scmp.lt.s32.totalorder %s1909_s17, %s1905_s25 }
 0x851   : > { %p1907_p5 = pnand %p1906_p9, %p2418_p3 }
 0x852   : > { %p1912_p1 = por %p1911_p12, %p1910_p10 }
 0x853   : > { %p1908_p6 = pneg %p1907_p5 }
 0x855   : > { %p1913_p2 = pnand %p1912_p1, %p1908_p6 }
 0x857   : > { %1916 = shalt.err (!%p1913_p2)
}
 0x858   : > { %1692 = dma.vmem_to_hbm [thread:$0]  (%p2418_p3), %s1354_s19, 128, %s2316_s27, %s1335_s30   ;;  %v1331_v46 = vmul.f32 2.0, %v2225_v49 }
 0x859   : > { %s2419_s21 = sshll.u32 %s2282_s15, 3  ;;  %s2420_s22 = sshll.u32 %s2100_s29, 7 }
 0x85a   : > { %s536_s20 = scalar_lea.vmem [#allocation11], %s2419_s21  ;;  %s1364_s24 = scalar_lea.hbm %s2387_s13, %s2420_s22 }
 0x85b   : > { %s1366_s23 = sshll.u32 %s536_s20, 4  ;;  %s1340_s16 = scalar_lea.sflag [#allocation12], %s2282_s15  ;;  %s1367_s23 = int_to_ptr.vmem [resolvable:$true] %s1366_s23 }
 0x85c   : > { %s1917_s17 = scalar_lea.vmem %s1367_s23, 128  ;;  %s2008_s27 = smov [#allocation11]  }
 0x85d   : > { %p1918_p4 = scmp.ne.s32.totalorder %s1367_s23, %s1917_s17  ;;  %s1921_s19 = sshll.u32 %s2008_s27, 4  ;;  %s1922_s19 = int_to_ptr.vmem [resolvable:$false] %s1921_s19 }
 0x85e   : > { %s1923_s30 = scalar_lea.vmem %s1922_s19, 256  ;;  %p1924_p11 = scmp.lt.s32.totalorder %s1367_s23, %s1922_s19 }
 0x85f   : > { %p1919_p7 = pnand %p1918_p4, %p2418_p3  ;;  %p1925_p0 = scmp.lt.s32.totalorder %s1923_s30, %s1917_s17 }
 0x861   : > { %p1920_p8 = pneg %p1919_p7  ;;  %p1926_p13 = por %p1925_p0, %p1924_p11 }
 0x863   : > { %p1927_p9 = pnand %p1926_p13, %p1920_p8 }
 0x8c7   : > { %v1328_v47 = vpop.permute.xlu0 %1327 }
 0x8c8   : > { %v1330_v48 = vmul.f32 %v1328_v47, %v1309_v38 }
 0x8ca   : > { %v1332_v51 = vadd.f32 %v1331_v46, %v1330_v48 }
 0x8cc   : > { %1333 = vst [vmem:[%s536_s20] sm:$0xff] %v1332_v51 }
 0x8cd   : > { %1930 = shalt.err (!%p1927_p9)
}
 0x8ce   : > { %s1931_s29 = scalar_lea.hbm %s1364_s24, 128  ;;  %s1935_s20 = scalar_lea.hbm %s2387_s13, 256 }
 0x8cf   : > { %p1932_p5 = scmp.ne.s32.totalorder %s1364_s24, %s1931_s29  ;;  %p1936_p12 = scmp.lt.s32.totalorder %s1364_s24, %s2387_s13 }
 0x8d0   : > { %p1937_p1 = scmp.lt.s32.totalorder %s1935_s20, %s1931_s29 }
 0x8d1   : > { %p1933_p6 = pnand %p1932_p5, %p2418_p3 }
 0x8d2   : > { %p1938_p2 = por %p1937_p1, %p1936_p12 }
 0x8d3   : > { %p1934_p10 = pneg %p1933_p6 }
 0x8d5   : > { %p1939_p4 = pnand %p1938_p2, %p1934_p10 }
 0x8d7   : > { %1942 = shalt.err (!%p1939_p4)
}
 0x8d8   : > { %1693 = dma.vmem_to_hbm [thread:$0]  (%p2418_p3), %s1367_s23, 128, %s1364_s24, %s1340_s16  }
 0x8d9 PF: > { %s2421_s25 = sld [smem:[#allocation18_spill]]  ;;  %p1724_p7 = scmp.ge.s32.totalorder %s1993_s28, 2 }
 0x8da   : > { %s2422_s17 = sld [smem:[#allocation22_spill]] }
 0x8df   : > { %s1378_s27 = sand.u32 1, %s2421_s25  }
 0x8e0   : > { %p2423_p8 = scmp.ne.s32.totalorder %s2422_s17, 0  ;;  %s1379_s19 = scalar_lea.sflag [#allocation4], %s1378_s27 }
 0x8e2   : > { %p1710_p11 = pnand %p1724_p7, %p2423_p8 }
 0x8e4   : > { %p1711_p0 = pneg %p1710_p11 }
 0x8e6   : > { %1972 = dma.done.wait (%p1711_p0), %s1379_s19, 128  }
 0x8e7   : > { %1974 = vsyncadd (%p1711_p0), %s1379_s19, 4294967168  ;;  %s1388_s30 = scalar_lea.sflag [#allocation12], %s1378_s27 }
 0x8e8   : > { %1976 = dma.done.wait (%p1711_p0), %s1388_s30, 128  }
 0x8e9   : > { %1978 = vsyncadd (%p1711_p0), %s1388_s30, 4294967168  ;;  %s2424_s28 = sld [smem:[#allocation20_spill]]  ;;  %s2427_s25 = smov %s1985_s26 }
 0x8ea   : > { %s2425_s29 = sld [smem:[#allocation19_spill]] }
 0x8eb   : > { %s2426_s27 = sld [smem:[#allocation21_spill]] }
 0x8ef   : > { %p30_p3 = scmp.ge.s32.totalorder %s2424_s28, 4  }
 0x8f0   : > { %s2428_s26 = smov %s2425_s29 }
 0x8f1   :  { %32 = sbr.rel (!%p30_p3) target bundleno = 8 (0x8), region = 146 }
 0x8f6   :  { %1393 = vsyncpa [#allocation3], 1 }
 0x8f7   :  { %1395 = vsyncpa [#allocation3 + $0x1], 1 }
 0x8f8   :  { %1396 = vsyncpa [#allocation6], 1 }
 0x8f9   :  { %1397 = vsyncpa [#allocation9], 1 }
 0x8fa   :  { %1398 = vsyncpa [#allocation4], 1 }
 0x8fb   :  { %1400 = vsyncpa [#allocation4 + $0x1], 1 }
 0x8fc   :  { %1401 = vsyncpa [#allocation12], 1 }
 0x8fd   :  { %1403 = vsyncpa [#allocation12 + $0x1], 1 }

</bundles_post_ra>
